<compile_context>
chip_gen: v7x
topology: tpu7x:2x2x1
jax: 0.10.0
libtpu: 0.0.40
codegen_flags: <defaults>
</compile_context>

<pallas_src>
import functools

import jax
import jax.numpy as jnp
from jax.experimental import pallas as pl
from jax.experimental.pallas import tpu as pltpu


def _round_up(n, m):
    return (n + m - 1) // m * m


# ---------------------------------------------------------------------------
# Kernel
# ---------------------------------------------------------------------------
def swiglu_kernel(x_ref, w1_ref, b1_ref, w2_ref, b2_ref, w3_ref, b3_ref,
                  o_ref, acc_ref, *, approx_gate=False):
    k = pl.program_id(1)

    # Fold b3 into the accumulator init: one broadcast per row tile, not per k step.
    @pl.when(k == 0)
    def _():
        acc_ref[...] = jnp.broadcast_to(b3_ref[...], acc_ref.shape)

    # Cast activations to the matmul dtype in-kernel (no wrapper-side cast pass).
    x = x_ref[...].astype(w1_ref.dtype)

    # h1_k = x @ W1^T[:, k-block] + b1_k ; h2_k = x @ W2^T[:, k-block] + b2_k
    h1 = jnp.dot(x, w1_ref[...], preferred_element_type=jnp.float32) + b1_ref[...]
    h2 = jnp.dot(x, w2_ref[...], preferred_element_type=jnp.float32) + b2_ref[...]

    # SiLU gate in f32 (VPU + EUP; v5e has no bf16 VPU/EUP so keep this f32).
    if approx_gate:
        sig = pl.reciprocal(1.0 + jnp.exp(-h1), approx=True)   # EUP slot, ~free
    else:
        sig = jax.nn.sigmoid(h1)
    g = h2 * (h1 * sig)                                         # (tm, tk) f32

    # acc += g_k @ W3^T[k-block, :]
    acc_ref[...] += jnp.dot(g.astype(w3_ref.dtype), w3_ref[...],
                            preferred_element_type=jnp.float32)

    @pl.when(k == pl.num_programs(1) - 1)
    def _():
        o_ref[...] = acc_ref[...].astype(o_ref.dtype)


# ---------------------------------------------------------------------------
# One-time (model-side) parameter prep: transpose, pad to lane multiples, cast.
# PyTorch nn.Linear layout in:  w1, w2: [dim, in_dim]; w3: [in_dim, dim]; biases 1-D.
# ---------------------------------------------------------------------------
def prepare_swiglu_params(w1, b1, w2, b2, w3, b3, matmul_dtype=jnp.float32):
    dim, in_dim = w1.shape
    in_dim_p = _round_up(in_dim, 128)
    dim_p = _round_up(dim, 128)

    def pad_t(w, rows, cols):                       # transpose + zero-pad + cast
        wt = jnp.asarray(w).T
        return jnp.pad(wt, ((0, rows - wt.shape[0]),
                            (0, cols - wt.shape[1]))).astype(matmul_dtype)

    def pad_b(b, cols):                             # biases stay f32 (post-accum add)
        return jnp.pad(jnp.asarray(b, jnp.float32), (0, cols - b.shape[0])).reshape(1, cols)

    return dict(
        w1t=pad_t(w1, in_dim_p, dim_p), b1=pad_b(b1, dim_p),
        w2t=pad_t(w2, in_dim_p, dim_p), b2=pad_b(b2, dim_p),
        w3t=pad_t(w3, dim_p, in_dim_p), b3=pad_b(b3, in_dim_p),
        in_dim=in_dim, dim=dim, in_dim_p=in_dim_p, dim_p=dim_p,
    )


# ---------------------------------------------------------------------------
# Tiling / VMEM sizing
# ---------------------------------------------------------------------------
def _vmem_budget_bytes():
    """~87% of this generation's VMEM capacity (per TensorCore), capped at 100 MiB."""
    try:
        cap = int(pltpu.get_tpu_info().vmem_capacity_bytes)
    except Exception:
        cap = 64 << 20          # conservative fallback (v7x per-TC size)
    return min(int(cap * 0.87), 100 << 20)


def _pick_tiles(n_rows, in_dim_p, dim_p, x_itemsz, w_itemsz, out_itemsz,
                budget, tm_req, tk_cap=None):
    """Pick (tm, tk, footprint_bytes). tm, tk multiples of 128; tk divides dim_p."""
    tm = max(128, _round_up(tm_req, 128))
    tm = min(tm, _round_up(n_rows, 128))

    def fixed_bytes(tm_):
        return (2 * tm_ * in_dim_p * x_itemsz        # x tile (double-buffered)
                + 2 * tm_ * in_dim_p * out_itemsz    # out tile (double-buffered)
                + tm_ * in_dim_p * 4                 # f32 accumulator scratch
                + 2 * in_dim_p * 4                   # b3
                + (6 << 20))                         # compiler/internal headroom

    per_tk = (2 * 2 * in_dim_p * w_itemsz            # W1^T + W2^T k-slabs (double-buf)
              + 2 * in_dim_p * w_itemsz              # W3^T k-slab (double-buf)
              + 2 * 2 * 4)                           # b1 + b2 k-slabs

    # Shrink tm first if even tk=128 does not fit the budget.
    while tm > 128 and fixed_bytes(tm) + 128 * per_tk > budget:
        tm -= 128

    tk_max = max(128, (budget - fixed_bytes(tm)) // per_tk)
    if tk_cap is not None:
        tk_max = max(128, min(tk_max, tk_cap))

    # tk must divide dim_p exactly (both multiples of 128) so every k-block is full
    # (no garbage from partial blocks feeding the reduction).
    m = dim_p // 128
    d = 1
    for cand in range(1, m + 1):
        if m % cand == 0 and cand * 128 <= tk_max:
            d = cand
    tk = d * 128

    return tm, tk, int(fixed_bytes(tm) + tk * per_tk)


# ---------------------------------------------------------------------------
# Wrapper
# ---------------------------------------------------------------------------
def swiglu_pallas(x, params, *, tm=512, out_dtype=None, approx_gate=False, tk_cap=None):
    """x: [N, in_dim]. Returns [N, in_dim] in out_dtype (default: x.dtype)."""
    N, in_dim = x.shape
    assert in_dim == params["in_dim"], "in_dim mismatch with prepared params"
    in_dim_p, dim_p = params["in_dim_p"], params["dim_p"]
    w_dtype = params["w1t"].dtype
    out_dtype = x.dtype if out_dtype is None else jnp.dtype(out_dtype)

    budget = _vmem_budget_bytes()
    tm, tk, footprint = _pick_tiles(
        N, in_dim_p, dim_p,
        jnp.dtype(x.dtype).itemsize, jnp.dtype(w_dtype).itemsize,
        jnp.dtype(out_dtype).itemsize, budget, tm, tk_cap)

    n_pad = _round_up(N, tm)
    n_k = dim_p // tk
    grid = (n_pad // tm, n_k)

    # Only pad when the shapes actually need it (aligned production shapes stream
    # straight through, no extra HBM pass; dtype is NOT changed here — cast is in-kernel).
    needs_pad = (n_pad != N) or (in_dim_p != in_dim)
    xp = jnp.pad(x, ((0, n_pad - N), (0, in_dim_p - in_dim))) if needs_pad else x

    # Cost hint so XLA schedules the fused call sensibly.
    flops = 6 * n_pad * in_dim_p * dim_p              # three matmuls, 2*M*K*N each
    transcendentals = n_pad * dim_p                   # sigmoid / exp
    w_keys = ("w1t", "b1", "w2t", "b2", "w3t", "b3")
    bytes_accessed = int(
        xp.size * jnp.dtype(xp.dtype).itemsize
        + sum(int(params[k].size) * jnp.dtype(params[k].dtype).itemsize for k in w_keys)
        + n_pad * in_dim_p * jnp.dtype(out_dtype).itemsize)
    cost = pl.CostEstimate(flops=int(flops), transcendentals=int(transcendentals),
                           bytes_accessed=bytes_accessed)

    # Never declare less VMEM than our own footprint estimate; otherwise use the
    # per-generation budget.
    vmem_limit = int(max(min(budget, max(footprint, 32 << 20)), footprint))

    out = pl.pallas_call(
        functools.partial(swiglu_kernel, approx_gate=approx_gate),
        out_shape=jax.ShapeDtypeStruct((n_pad, in_dim_p), out_dtype),
        grid_spec=pltpu.PrefetchScalarGridSpec(
            num_scalar_prefetch=0,
            grid=grid,
            in_specs=[
                pl.BlockSpec((tm, in_dim_p), lambda i, k: (i, 0)),   # x row tile
                pl.BlockSpec((in_dim_p, tk), lambda i, k: (0, k)),   # W1^T k-slab
                pl.BlockSpec((1, tk),        lambda i, k: (0, k)),   # b1 k-slab
                pl.BlockSpec((in_dim_p, tk), lambda i, k: (0, k)),   # W2^T k-slab
                pl.BlockSpec((1, tk),        lambda i, k: (0, k)),   # b2 k-slab
                pl.BlockSpec((tk, in_dim_p), lambda i, k: (k, 0)),   # W3^T k-slab
                pl.BlockSpec((1, in_dim_p),  lambda i, k: (0, 0)),   # b3 (constant)
            ],
            out_specs=pl.BlockSpec((tm, in_dim_p), lambda i, k: (i, 0)),
            scratch_shapes=[pltpu.VMEM((tm, in_dim_p), jnp.float32)],  # f32 accumulator
        ),
        compiler_params=pltpu.CompilerParams(
            # token axis parallel (megacore on v7x), hidden reduction axis arbitrary (last)
            dimension_semantics=("parallel", "arbitrary"),
            vmem_limit_bytes=vmem_limit),
        cost_estimate=cost,
    )(xp, params["w1t"], params["b1"], params["w2t"], params["b2"],
      params["w3t"], params["b3"])

    if needs_pad:
        out = out[:N, :in_dim]
    return out


# ---------------------------------------------------------------------------
# Reference (full-precision matmuls so precision differences don't mask bugs)
# ---------------------------------------------------------------------------
def swiglu_ref(x, w1, b1, w2, b2, w3, b3):
    hp = jax.lax.Precision.HIGHEST
    h1 = jnp.dot(x, w1.T, precision=hp) + b1
    h2 = jnp.dot(x, w2.T, precision=hp) + b2
    g = h2 * (h1 * jax.nn.sigmoid(h1))
    return jnp.dot(g, w3.T, precision=hp) + b3


def _make_linear_params(key, dim, in_dim, dim3_in, dim3_out):
    k1, kb1, k2, kb2, k3, kb3 = jax.random.split(key, 6)
    bound1 = 1.0 / (in_dim ** 0.5)
    bound3 = 1.0 / (dim3_in ** 0.5)
    w1 = jax.random.uniform(k1, (dim, in_dim), minval=-bound1, maxval=bound1)
    b1 = jax.random.uniform(kb1, (dim,), minval=-bound1, maxval=bound1)
    w2 = jax.random.uniform(k2, (dim, in_dim), minval=-bound1, maxval=bound1)
    b2 = jax.random.uniform(kb2, (dim,), minval=-bound1, maxval=bound1)
    w3 = jax.random.uniform(k3, (dim3_out, dim3_in), minval=-bound3, maxval=bound3)
    b3 = jax.random.uniform(kb3, (dim3_out,), minval=-bound3, maxval=bound3)
    return w1, b1, w2, b2, w3, b3


if __name__ == "__main__":
    # --- Test 1: small shapes consistent with the module: batch=2, seq=8, in_dim=32, dim=64
    batch, seq, in_dim, dim = 2, 8, 32, 64
    key = jax.random.PRNGKey(0)
    kx, kp, kx2, kp2 = jax.random.split(key, 4)

    x = jax.random.normal(kx, (batch, seq, in_dim), dtype=jnp.float32)
    w1, b1, w2, b2, w3, b3 = _make_linear_params(kp, dim, in_dim, dim, in_dim)

    x2d = x.reshape(-1, in_dim)                       # token-major flatten
    ref = swiglu_ref(x2d, w1, b1, w2, b2, w3, b3)

    # f32 matmul path (tolerance covers MXU multi-pass f32 vs XLA dot precision).
    params_f32 = prepare_swiglu_params(w1, b1, w2, b2, w3, b3, matmul_dtype=jnp.float32)
    out2d = swiglu_pallas(x2d, params_f32)
    jax.block_until_ready(out2d)
    assert jnp.allclose(out2d, ref, atol=1e-2, rtol=1e-2), "f32 mismatch vs reference"

    # bf16 matmul path: bf16 MXU inputs + bf16 output + EUP approx gate, f32 accumulation.
    params_bf16 = prepare_swiglu_params(w1, b1, w2, b2, w3, b3, matmul_dtype=jnp.bfloat16)
    out2d_bf16 = swiglu_pallas(x2d, params_bf16, out_dtype=jnp.bfloat16, approx_gate=True)
    jax.block_until_ready(out2d_bf16)
    assert jnp.allclose(out2d_bf16.astype(jnp.float32), ref, atol=5e-2, rtol=5e-2), \
        "bf16 mismatch vs reference"

    # --- Test 2: force multiple hidden-dim reduction steps (tk_cap=128 -> n_k=3)
    in_dim2, dim2 = 64, 384
    x2 = jax.random.normal(kx2, (batch * seq, in_dim2), dtype=jnp.float32)
    w1b, b1b, w2b, b2b, w3b, b3b = _make_linear_params(kp2, dim2, in_dim2, dim2, in_dim2)
    ref2 = swiglu_ref(x2, w1b, b1b, w2b, b2b, w3b, b3b)
    params2 = prepare_swiglu_params(w1b, b1b, w2b, b2b, w3b, b3b, matmul_dtype=jnp.float32)
    out2 = swiglu_pallas(x2, params2, tk_cap=128)     # exercises the accumulator path
    jax.block_until_ready(out2)
    assert jnp.allclose(out2, ref2, atol=1e-2, rtol=1e-2), "k-tiled mismatch vs reference"

    out = out2d.reshape(batch, seq, in_dim)
    jax.block_until_ready(out)
    print("KERNEL_OK")
</pallas_src>

<mosaic_0001>
module attributes {stable_mosaic.version = 11 : i64} {
  func.func @swiglu_kernel(%arg0: i32, %arg1: i32, %arg2: memref<128x128xf32, #tpu.memory_space<vmem>>, %arg3: memref<128x128xf32, #tpu.memory_space<vmem>>, %arg4: memref<1x128xf32, #tpu.memory_space<vmem>>, %arg5: memref<128x128xf32, #tpu.memory_space<vmem>>, %arg6: memref<1x128xf32, #tpu.memory_space<vmem>>, %arg7: memref<128x128xf32, #tpu.memory_space<vmem>>, %arg8: memref<1x128xf32, #tpu.memory_space<vmem>>, %arg9: memref<128x128xf32, #tpu.memory_space<vmem>>, %arg10: memref<128x128xf32, #tpu.memory_space<vmem>>) attributes {dimension_semantics = [#tpu.dimension_semantics<parallel>, #tpu.dimension_semantics<arbitrary>], iteration_bounds = array<i64: 1, 1>, scalar_prefetch = 0 : i64, scratch_operands = 1 : i64, tpu.core_type = #tpu.core_type<tc>, window_params = [{transform_indices = @transform_0, window_bounds = array<i64: 128, 128>}, {transform_indices = @transform_1, window_bounds = array<i64: 128, 128>}, {transform_indices = @transform_2, window_bounds = array<i64: 1, 128>}, {transform_indices = @transform_3, window_bounds = array<i64: 128, 128>}, {transform_indices = @transform_4, window_bounds = array<i64: 1, 128>}, {transform_indices = @transform_5, window_bounds = array<i64: 128, 128>}, {pipeline_mode = #tpu.pipeline_mode<synchronous>, transform_indices = @transform_6, window_bounds = array<i64: 1, 128>}, {transform_indices = @transform_7, window_bounds = array<i64: 128, 128>}]} {
    %c0_i32 = arith.constant 0 : i32
    %0 = arith.cmpi eq, %arg1, %c0_i32 : i32
    %1 = arith.extui %0 : i1 to i32
    %c0_i32_0 = arith.constant 0 : i32
    %2 = arith.cmpi ne, %1, %c0_i32_0 : i32
    scf.if %2 {
      %c0_21 = arith.constant 0 : index
      %c0_22 = arith.constant 0 : index
      %29 = vector.load %arg8[%c0_21, %c0_22] : memref<1x128xf32, #tpu.memory_space<vmem>>, vector<1x128xf32>
      %30 = vector.shape_cast %29 : vector<1x128xf32> to vector<1x128xf32>
      %31 = vector.broadcast %30 : vector<1x128xf32> to vector<128x128xf32>
      %c0_23 = arith.constant 0 : index
      %c0_24 = arith.constant 0 : index
      %32 = vector.load %arg10[%c0_23, %c0_24] : memref<128x128xf32, #tpu.memory_space<vmem>>, vector<128x128xf32>
      tpu.vector_store %arg10[%c0_23, %c0_24], %31 {strides = array<i32>} : memref<128x128xf32, #tpu.memory_space<vmem>>, vector<128x128xf32>,
    } else {
    }
    %c0 = arith.constant 0 : index
    %c0_1 = arith.constant 0 : index
    %3 = vector.load %arg2[%c0, %c0_1] : memref<128x128xf32, #tpu.memory_space<vmem>>, vector<128x128xf32>
    %c0_2 = arith.constant 0 : index
    %c0_3 = arith.constant 0 : index
    %4 = vector.load %arg3[%c0_2, %c0_3] : memref<128x128xf32, #tpu.memory_space<vmem>>, vector<128x128xf32>
    %cst = arith.constant dense<0.000000e+00> : vector<128x128xf32>
    %5 = tpu.matmul %3, %4, %cst {dimension_numbers = #tpu.dot_dimension_numbers<[1], [0], [0], [1], [0, 0, 1, 1], [], []>} : vector<128x128xf32>, vector<128x128xf32>, vector<128x128xf32> -> vector<128x128xf32>
    %c0_4 = arith.constant 0 : index
    %c0_5 = arith.constant 0 : index
    %6 = vector.load %arg4[%c0_4, %c0_5] : memref<1x128xf32, #tpu.memory_space<vmem>>, vector<1x128xf32>
    %7 = vector.broadcast %6 : vector<1x128xf32> to vector<128x128xf32>
    %8 = arith.addf %5, %7 : vector<128x128xf32>
    %c0_6 = arith.constant 0 : index
    %c0_7 = arith.constant 0 : index
    %9 = vector.load %arg5[%c0_6, %c0_7] : memref<128x128xf32, #tpu.memory_space<vmem>>, vector<128x128xf32>
    %cst_8 = arith.constant dense<0.000000e+00> : vector<128x128xf32>
    %10 = tpu.matmul %3, %9, %cst_8 {dimension_numbers = #tpu.dot_dimension_numbers<[1], [0], [0], [1], [0, 0, 1, 1], [], []>} : vector<128x128xf32>, vector<128x128xf32>, vector<128x128xf32> -> vector<128x128xf32>
    %c0_9 = arith.constant 0 : index
    %c0_10 = arith.constant 0 : index
    %11 = vector.load %arg6[%c0_9, %c0_10] : memref<1x128xf32, #tpu.memory_space<vmem>>, vector<1x128xf32>
    %12 = vector.broadcast %11 : vector<1x128xf32> to vector<128x128xf32>
    %13 = arith.addf %10, %12 : vector<128x128xf32>
    %14 = arith.negf %8 : vector<128x128xf32>
    %15 = math.exp %14 : vector<128x128xf32>
    %cst_11 = arith.constant 1.000000e+00 : f32
    %16 = vector.broadcast %cst_11 : f32 to vector<128x128xf32>
    %17 = arith.addf %16, %15 : vector<128x128xf32>
    %18 = arith.divf %16, %17 : vector<128x128xf32>
    %19 = arith.mulf %8, %18 : vector<128x128xf32>
    %20 = arith.mulf %13, %19 : vector<128x128xf32>
    %c0_12 = arith.constant 0 : index
    %c0_13 = arith.constant 0 : index
    %21 = vector.load %arg10[%c0_12, %c0_13] : memref<128x128xf32, #tpu.memory_space<vmem>>, vector<128x128xf32>
    %c0_14 = arith.constant 0 : index
    %c0_15 = arith.constant 0 : index
    %22 = vector.load %arg7[%c0_14, %c0_15] : memref<128x128xf32, #tpu.memory_space<vmem>>, vector<128x128xf32>
    %cst_16 = arith.constant dense<0.000000e+00> : vector<128x128xf32>
    %23 = tpu.matmul %20, %22, %cst_16 {dimension_numbers = #tpu.dot_dimension_numbers<[1], [0], [0], [1], [0, 0, 1, 1], [], []>} : vector<128x128xf32>, vector<128x128xf32>, vector<128x128xf32> -> vector<128x128xf32>
    %24 = arith.addf %21, %23 : vector<128x128xf32>
    %c0_17 = arith.constant 0 : index
    %c0_18 = arith.constant 0 : index
    %25 = vector.load %arg10[%c0_17, %c0_18] : memref<128x128xf32, #tpu.memory_space<vmem>>, vector<128x128xf32>
    tpu.vector_store %arg10[%c0_17, %c0_18], %24 {strides = array<i32>} : memref<128x128xf32, #tpu.memory_space<vmem>>, vector<128x128xf32>,
    %c0_i32_19 = arith.constant 0 : i32
    %26 = arith.cmpi eq, %arg1, %c0_i32_19 : i32
    %27 = arith.extui %26 : i1 to i32
    %c0_i32_20 = arith.constant 0 : i32
    %28 = arith.cmpi ne, %27, %c0_i32_20 : i32
    scf.if %28 {
      %c0_21 = arith.constant 0 : index
      %c0_22 = arith.constant 0 : index
      %29 = vector.load %arg10[%c0_21, %c0_22] : memref<128x128xf32, #tpu.memory_space<vmem>>, vector<128x128xf32>
      %c0_23 = arith.constant 0 : index
      %c0_24 = arith.constant 0 : index
      %30 = vector.load %arg9[%c0_23, %c0_24] : memref<128x128xf32, #tpu.memory_space<vmem>>, vector<128x128xf32>
      tpu.vector_store %arg9[%c0_23, %c0_24], %29 {strides = array<i32>} : memref<128x128xf32, #tpu.memory_space<vmem>>, vector<128x128xf32>,
    } else {
    }
    return
  }
  func.func @transform_0(%arg0: i32, %arg1: i32) -> (i32, i32) {
    %c0_i32 = arith.constant 0 : i32
    %c0_i32_0 = arith.constant 0 : i32
    return %arg0, %c0_i32 : i32, i32
  }
  func.func @transform_1(%arg0: i32, %arg1: i32) -> (i32, i32) {
    %c0_i32 = arith.constant 0 : i32
    %c0_i32_0 = arith.constant 0 : i32
    return %c0_i32, %arg1 : i32, i32
  }
  func.func @transform_2(%arg0: i32, %arg1: i32) -> (i32, i32) {
    %c0_i32 = arith.constant 0 : i32
    %c0_i32_0 = arith.constant 0 : i32
    return %c0_i32, %arg1 : i32, i32
  }
  func.func @transform_3(%arg0: i32, %arg1: i32) -> (i32, i32) {
    %c0_i32 = arith.constant 0 : i32
    %c0_i32_0 = arith.constant 0 : i32
    return %c0_i32, %arg1 : i32, i32
  }
  func.func @transform_4(%arg0: i32, %arg1: i32) -> (i32, i32) {
    %c0_i32 = arith.constant 0 : i32
    %c0_i32_0 = arith.constant 0 : i32
    return %c0_i32, %arg1 : i32, i32
  }
  func.func @transform_5(%arg0: i32, %arg1: i32) -> (i32, i32) {
    %c0_i32 = arith.constant 0 : i32
    %c0_i32_0 = arith.constant 0 : i32
    return %arg1, %c0_i32 : i32, i32
  }
  func.func @transform_6(%arg0: i32, %arg1: i32) -> (i32, i32) {
    %c0_i32 = arith.constant 0 : i32
    %c0_i32_0 = arith.constant 0 : i32
    %c0_i32_1 = arith.constant 0 : i32
    return %c0_i32, %c0_i32_0 : i32, i32
  }
  func.func @transform_7(%arg0: i32, %arg1: i32) -> (i32, i32) {
    %c0_i32 = arith.constant 0 : i32
    %c0_i32_0 = arith.constant 0 : i32
    return %arg0, %c0_i32 : i32, i32
  }
}

</mosaic_0001>

<bundles_post_ra>
// kernel: tpu_custom_call.1
= control target key start
LH: loop header
LB: loop body
LE: loop exit
PB: predicated region body
PF: predicated region fallthrough
CT: control target
= control target key end

     0   :  { %12 = vsyncpa [#allocation4], 0  ;;  %s1729_s0 = inlined_call_operand.hbm [shape: f32[128,128], index: 0, kind: input, shape index: {}]   ;;  %s1730_s1 = inlined_call_operand.hbm [shape: f32[128,128], index: 1, kind: input, shape index: {}]   ;;  %s1731_s2 = inlined_call_operand.vmem [shape: f32[1,128], index: 2, kind: input, shape index: {}]   ;;  %s1732_s3 = inlined_call_operand.hbm [shape: f32[128,128], index: 3, kind: input, shape index: {}]   ;;  %s1733_s4 = inlined_call_operand.vmem [shape: f32[1,128], index: 4, kind: input, shape index: {}]   ;;  %s1734_s5 = inlined_call_operand.hbm [shape: f32[128,128], index: 5, kind: input, shape index: {}]   ;;  %s1735_s6 = inlined_call_operand.vmem [shape: f32[1,128], index: 6, kind: input, shape index: {}]   ;;  %s1736_s7 = inlined_call_operand.hbm [shape: f32[128,128], index: 7, kind: output, shape index: {}]  }
   0x1   :  { %13 = vsyncpa [#allocation7], 0 }
   0x2   :  { %14 = vsyncpa [#allocation10], 0 }
   0x3   :  { %15 = vsyncpa [#allocation5], 0  ;;  %s1436_s24 = smov [#allocation6]   ;;  %s1437_s26 = smov [#allocation3]  }
   0x4   :  { %s33_s25 = sshll.u32 %s1436_s24, 4  ;;  %s21_s27 = sshll.u32 %s1437_s26, 4  ;;  %s34_s25 = int_to_ptr.vmem [resolvable:$true] %s33_s25  ;;  %s1483_s27 = int_to_ptr.vmem [resolvable:$true] %s21_s27 }
   0x5   :  { %s1318_s30 = scalar_lea.hbm %s1730_s1, 2048 }
   0x6   :  { %p1319_p0 = scmp.ne.s32.totalorder %s1730_s1, %s1318_s30  ;;  %p1322_p1 = scmp.lt.u32.totalorder %s1318_s30, %s1730_s1 }
   0x8   :  { %p1324_p2 = pnand %p1322_p1, %p1319_p0 }
   0xa   :  { %1327 = shalt.err (!%p1324_p2)
}
   0xb   :  { %s1328_s12 = scalar_lea.vmem %s34_s25, 2048  ;;  %p1333_p4 = scmp.lt.s32.totalorder %s34_s25, %s34_s25 }
   0xc   :  { %p1329_p3 = scmp.ne.s32.totalorder %s34_s25, %s1328_s12  ;;  %p1334_p5 = scmp.lt.s32.totalorder %s1328_s12, %s1328_s12 }
   0xe   :  { %p1335_p6 = por %p1334_p5, %p1333_p4 }
  0x10   :  { %p1336_p7 = pnand %p1335_p6, %p1329_p3 }
  0x12   :  { %1339 = shalt.err (!%p1336_p7)
}
  0x13   :  { %s1438_s13 = smov 128   ;;  %s1439_s14 = smov 8  }
  0x14   :  { %39 = dma.hbm_to_vmem [thread:$0]  %s1730_s1, 2048, %s34_s25, [#allocation7], %s1438_s13, %s1438_s13, %s1439_s14  }
  0x15   :  { %s1340_s19 = scalar_lea.hbm %s1729_s0, 2048 }
  0x16   :  { %p1341_p8 = scmp.ne.s32.totalorder %s1729_s0, %s1340_s19  ;;  %p1344_p9 = scmp.lt.u32.totalorder %s1340_s19, %s1729_s0 }
  0x18   :  { %p1346_p10 = pnand %p1344_p9, %p1341_p8 }
  0x1a   :  { %1349 = shalt.err (!%p1346_p10)
}
  0x1b   :  { %s1350_s24 = scalar_lea.vmem %s1483_s27, 2048  ;;  %p1355_p12 = scmp.lt.s32.totalorder %s1483_s27, %s1483_s27 }
  0x1c   :  { %p1351_p11 = scmp.ne.s32.totalorder %s1483_s27, %s1350_s24  ;;  %p1356_p13 = scmp.lt.s32.totalorder %s1350_s24, %s1350_s24 }
  0x1e   :  { %p1357_p0 = por %p1356_p13, %p1355_p12 }
  0x20   :  { %p1358_p1 = pnand %p1357_p0, %p1351_p11 }
  0x22   :  { %1361 = shalt.err (!%p1358_p1)
}
  0x23   :  { %27 = dma.hbm_to_vmem [thread:$0]  %s1729_s0, 2048, %s1483_s27, [#allocation4], %s1438_s13, %s1438_s13, %s1439_s14  }
  0x24   :  { %s1440_s26 = smov [#allocation8]   ;;  %s1441_s29 = smov [#allocation9]  }
  0x25   :  { %s47_s28 = sshll.u32 %s1440_s26, 4  ;;  %s61_s30 = sshll.u32 %s1441_s29, 4  ;;  %s48_s28 = int_to_ptr.vmem [resolvable:$true] %s47_s28  ;;  %s1520_s30 = int_to_ptr.vmem [resolvable:$true] %s61_s30 }
  0x26   :  { %s1362_s10 = scalar_lea.hbm %s1732_s3, 2048 }
  0x27   :  { %p1363_p2 = scmp.ne.s32.totalorder %s1732_s3, %s1362_s10  ;;  %p1366_p3 = scmp.lt.u32.totalorder %s1362_s10, %s1732_s3 }
  0x29   :  { %p1368_p4 = pnand %p1366_p3, %p1363_p2 }
  0x2b   :  { %1371 = shalt.err (!%p1368_p4)
}
  0x2c   :  { %s1372_s0 = scalar_lea.vmem %s48_s28, 2048  ;;  %p1377_p6 = scmp.lt.s32.totalorder %s48_s28, %s48_s28 }
  0x2d   :  { %p1373_p5 = scmp.ne.s32.totalorder %s48_s28, %s1372_s0  ;;  %p1378_p7 = scmp.lt.s32.totalorder %s1372_s0, %s1372_s0 }
  0x2f   :  { %p1379_p8 = por %p1378_p7, %p1377_p6 }
  0x31   :  { %p1380_p9 = pnand %p1379_p8, %p1373_p5 }
  0x33   :  { %1383 = shalt.err (!%p1380_p9)
}
  0x34   :  { %53 = dma.hbm_to_vmem [thread:$0]  %s1732_s3, 2048, %s48_s28, [#allocation7], %s1438_s13, %s1438_s13, %s1439_s14  }
  0x35   :  { %s1384_s20 = scalar_lea.hbm %s1734_s5, 2048 }
  0x36   :  { %p1385_p10 = scmp.ne.s32.totalorder %s1734_s5, %s1384_s20  ;;  %p1388_p11 = scmp.lt.u32.totalorder %s1384_s20, %s1734_s5 }
  0x38   :  { %p1390_p12 = pnand %p1388_p11, %p1385_p10 }
  0x3a   :  { %1393 = shalt.err (!%p1390_p12)
}
  0x3b   :  { %s1394_s1 = scalar_lea.vmem %s1520_s30, 2048  ;;  %p1399_p0 = scmp.lt.s32.totalorder %s1520_s30, %s1520_s30 }
  0x3c   :  { %p1395_p13 = scmp.ne.s32.totalorder %s1520_s30, %s1394_s1  ;;  %p1400_p1 = scmp.lt.s32.totalorder %s1394_s1, %s1394_s1 }
  0x3e   :  { %p1401_p2 = por %p1400_p1, %p1399_p0 }
  0x40   :  { %p1402_p3 = pnand %p1401_p2, %p1395_p13 }
  0x42   :  { %1405 = shalt.err (!%p1402_p3)
}
  0x43   :  { %67 = dma.hbm_to_vmem [thread:$0]  %s1734_s5, 2048, %s1520_s30, [#allocation10], %s1438_s13, %s1438_s13, %s1439_s14  }
  0x44   :  { %1428 = dma.done.wait [#allocation4], 2048  }
  0x45   :  { %1429 = vsyncadd [#allocation4], 4294965248 }
  0x46   :  { %1430 = dma.done.wait [#allocation7], 4096  }
  0x47   :  { %1431 = vsyncadd [#allocation7], 4294963200 }
  0x48   :  { %1432 = dma.done.wait [#allocation10], 2048  }
  0x49   :  { %1433 = vsyncadd [#allocation10], 4294965248  ;;  %v125_v0 = vld [vmem:[#allocation6] sm:$0xff]  ;;  %v126_v1 = vld [vmem:[#allocation6 + $0x8] sm:$0xff] }
  0x4a   :  { %v127_v2 = vld [vmem:[#allocation6 + $0x10] sm:$0xff]  ;;  %v1135_v3 = vpack.c.bf16 %v126_v1, %v125_v0  ;;  %v128_v4 = vld [vmem:[#allocation6 + $0x18] sm:$0xff]  ;;  %v129_v6 = vld [vmem:[#allocation6 + $0x20] sm:$0xff] }
  0x4b   :  { %v1139_v5 = vpack.c.bf16 %v128_v4, %v127_v2  ;;  %v130_v7 = vld [vmem:[#allocation6 + $0x28] sm:$0xff]  ;;  %v293_v8 = vld [vmem:[#allocation8] sm:$0xff]  ;;  %v131_v10 = vld [vmem:[#allocation6 + $0x30] sm:$0xff] }
  0x4c   :  { %1136 = vmatprep.subr.bf16.mxu0 %v1135_v3  ;;  %v1143_v9 = vpack.c.bf16 %v130_v7, %v129_v6  ;;  %v132_v11 = vld [vmem:[#allocation6 + $0x38] sm:$0xff]  ;;  %v294_v12 = vld [vmem:[#allocation8 + $0x8] sm:$0xff]  ;;  %v109_v14 = vld [vmem:[#allocation3] sm:$0xff] }
  0x4d   :  { %1138 = vmatpush3.bf16.msra.mxu0 %v1135_v3  ;;  %v1167_v13 = vpack.c.bf16 %v294_v12, %v293_v8  ;;  %v295_v15 = vld [vmem:[#allocation8 + $0x10] sm:$0xff]  ;;  %v296_v16 = vld [vmem:[#allocation8 + $0x18] sm:$0xff]  ;;  %999 = vmatprep.mubr.f32.mxu0 %v109_v14  ;;  %v297_v18 = vld [vmem:[#allocation8 + $0x20] sm:$0xff]  ;;  %v1147_v20 = vpack.c.bf16 %v132_v11, %v131_v10 }
  0x4e   :  { %1140 = vmatprep.subr.bf16.mxu0 %v1139_v5  ;;  %v1171_v17 = vpack.c.bf16 %v296_v16, %v295_v15  ;;  %1055 = vmatprep.mubr.f32.mxu1 %v109_v14  ;;  %v298_v19 = vld [vmem:[#allocation8 + $0x28] sm:$0xff]  ;;  %v133_v21 = vld [vmem:[#allocation6 + $0x40] sm:$0xff]  ;;  %v299_v24 = vld [vmem:[#allocation8 + $0x30] sm:$0xff] }
  0x4f   :  { %1168 = vmatprep.subr.bf16.mxu1 %v1167_v13  ;;  %v134_v22 = vld [vmem:[#allocation6 + $0x48] sm:$0xff]  ;;  %v1175_v23 = vpack.c.bf16 %v298_v19, %v297_v18  ;;  %v300_v25 = vld [vmem:[#allocation8 + $0x38] sm:$0xff]  ;;  %v135_v27 = vld [vmem:[#allocation6 + $0x50] sm:$0xff] }
  0x50   :  { %1170 = vmatpush3.bf16.msra.mxu1 %v1167_v13  ;;  %v1151_v26 = vpack.c.bf16 %v134_v22, %v133_v21  ;;  %v136_v28 = vld [vmem:[#allocation6 + $0x58] sm:$0xff]  ;;  %v1179_v29 = vpack.c.bf16 %v300_v25, %v299_v24  ;;  %v301_v30 = vld [vmem:[#allocation8 + $0x40] sm:$0xff]  ;;  %v302_v31 = vld [vmem:[#allocation8 + $0x48] sm:$0xff] }
  0x51   :  { %1142 = vmatpush3.bf16.msra.mxu0 %v1139_v5  ;;  %1172 = vmatprep.subr.bf16.mxu1 %v1171_v17  ;;  %v1155_v32 = vpack.c.bf16 %v136_v28, %v135_v27  ;;  %v137_v33 = vld [vmem:[#allocation6 + $0x60] sm:$0xff]  ;;  %v138_v34 = vld [vmem:[#allocation6 + $0x68] sm:$0xff]  ;;  %v1183_v35 = vpack.c.bf16 %v302_v31, %v301_v30  ;;  %v303_v36 = vld [vmem:[#allocation8 + $0x50] sm:$0xff] }
  0x52   :  { %1144 = vmatprep.subr.bf16.mxu0 %v1143_v9  ;;  %v304_v37 = vld [vmem:[#allocation8 + $0x58] sm:$0xff]  ;;  %v1159_v38 = vpack.c.bf16 %v138_v34, %v137_v33  ;;  %v139_v39 = vld [vmem:[#allocation6 + $0x70] sm:$0xff]  ;;  %v305_v42 = vld [vmem:[#allocation8 + $0x60] sm:$0xff] }
  0x53   :  { %v140_v40 = vld [vmem:[#allocation6 + $0x78] sm:$0xff]  ;;  %v1187_v41 = vpack.c.bf16 %v304_v37, %v303_v36  ;;  %v306_v43 = vld [vmem:[#allocation8 + $0x68] sm:$0xff]  ;;  %v307_v46 = vld [vmem:[#allocation8 + $0x70] sm:$0xff] }
  0x54   :  { %1174 = vmatpush3.bf16.msra.mxu1 %v1171_v17  ;;  %v1163_v44 = vpack.c.bf16 %v140_v40, %v139_v39  ;;  %v1191_v45 = vpack.c.bf16 %v306_v43, %v305_v42  ;;  %v308_v47 = vld [vmem:[#allocation8 + $0x78] sm:$0xff]  ;;  %v110_v49 = vld [vmem:[#allocation3 + $0x8] sm:$0xff]  ;;  %v111_v50 = vld [vmem:[#allocation3 + $0x10] sm:$0xff] }
  0x55   :  { %1146 = vmatpush3.bf16.msra.mxu0 %v1143_v9  ;;  %1176 = vmatprep.subr.bf16.mxu1 %v1175_v23  ;;  %v1195_v48 = vpack.c.bf16 %v308_v47, %v307_v46  ;;  %v112_v51 = vld [vmem:[#allocation3 + $0x18] sm:$0xff]  ;;  %v113_v52 = vld [vmem:[#allocation3 + $0x20] sm:$0xff]  ;;  %v114_v53 = vld [vmem:[#allocation3 + $0x28] sm:$0xff] }
  0x56   :  { %1148 = vmatprep.subr.bf16.mxu0 %v1147_v20  ;;  %v115_v54 = vld [vmem:[#allocation3 + $0x30] sm:$0xff]  ;;  %v116_v55 = vld [vmem:[#allocation3 + $0x38] sm:$0xff]  ;;  %v117_v56 = vld [vmem:[#allocation3 + $0x40] sm:$0xff] }
  0x57   :  { %v118_v57 = vld [vmem:[#allocation3 + $0x48] sm:$0xff]  ;;  %v119_v58 = vld [vmem:[#allocation3 + $0x50] sm:$0xff]  ;;  %v120_v59 = vld [vmem:[#allocation3 + $0x58] sm:$0xff] }
  0x58   :  { %1178 = vmatpush3.bf16.msra.mxu1 %v1175_v23  ;;  %v121_v60 = vld [vmem:[#allocation3 + $0x60] sm:$0xff]  ;;  %v122_v61 = vld [vmem:[#allocation3 + $0x68] sm:$0xff]  ;;  %v123_v62 = vld [vmem:[#allocation3 + $0x70] sm:$0xff] }
  0x59   :  { %1150 = vmatpush3.bf16.msra.mxu0 %v1147_v20  ;;  %1180 = vmatprep.subr.bf16.mxu1 %v1179_v29  ;;  %v124_v63 = vld [vmem:[#allocation3 + $0x78] sm:$0xff]  ;;  %v605_v0 = vld [vmem:[#allocation9] sm:$0xff]  ;;  %v606_v1 = vld [vmem:[#allocation9 + $0x8] sm:$0xff] }
  0x5a   :  { %1152 = vmatprep.subr.bf16.mxu0 %v1151_v26  ;;  %v1199_v2 = vpack.c.bf16 %v606_v1, %v605_v0  ;;  %v607_v3 = vld [vmem:[#allocation9 + $0x10] sm:$0xff]  ;;  %v608_v4 = vld [vmem:[#allocation9 + $0x18] sm:$0xff]  ;;  %v609_v6 = vld [vmem:[#allocation9 + $0x20] sm:$0xff] }
  0x5b   :  { %v1203_v5 = vpack.c.bf16 %v608_v4, %v607_v3  ;;  %v610_v7 = vld [vmem:[#allocation9 + $0x28] sm:$0xff]  ;;  %v611_v9 = vld [vmem:[#allocation9 + $0x30] sm:$0xff]  ;;  %v612_v10 = vld [vmem:[#allocation9 + $0x38] sm:$0xff] }
  0x5c   :  { %1182 = vmatpush3.bf16.msra.mxu1 %v1179_v29  ;;  %v1207_v8 = vpack.c.bf16 %v610_v7, %v609_v6  ;;  %v1211_v11 = vpack.c.bf16 %v612_v10, %v611_v9  ;;  %v613_v12 = vld [vmem:[#allocation9 + $0x40] sm:$0xff]  ;;  %v614_v13 = vld [vmem:[#allocation9 + $0x48] sm:$0xff]  ;;  %v615_v15 = vld [vmem:[#allocation9 + $0x50] sm:$0xff] }
  0x5d   :  { %1154 = vmatpush3.bf16.msra.mxu0 %v1151_v26  ;;  %1184 = vmatprep.subr.bf16.mxu1 %v1183_v35  ;;  %v1215_v14 = vpack.c.bf16 %v614_v13, %v613_v12  ;;  %v616_v16 = vld [vmem:[#allocation9 + $0x58] sm:$0xff]  ;;  %v617_v18 = vld [vmem:[#allocation9 + $0x60] sm:$0xff]  ;;  %v618_v19 = vld [vmem:[#allocation9 + $0x68] sm:$0xff] }
  0x5e   :  { %1156 = vmatprep.subr.bf16.mxu0 %v1155_v32  ;;  %v1219_v17 = vpack.c.bf16 %v616_v16, %v615_v15  ;;  %v1223_v20 = vpack.c.bf16 %v618_v19, %v617_v18  ;;  %v619_v21 = vld [vmem:[#allocation9 + $0x70] sm:$0xff]  ;;  %v620_v22 = vld [vmem:[#allocation9 + $0x78] sm:$0xff]  ;;  %v1560_v24 = vld [vmem:[%s1731_s2] ss:$0 sm:$0xff] }
  0x5f   :  { %v1227_v23 = vpack.c.bf16 %v620_v22, %v619_v21  ;;  %v1633_v19 = vld [vmem:[%s1733_s4] ss:$0 sm:$0xff] }
  0x60   :  { %1186 = vmatpush3.bf16.msra.mxu1 %v1183_v35 }
  0x61   :  { %1158 = vmatpush3.bf16.msra.mxu0 %v1155_v32  ;;  %1188 = vmatprep.subr.bf16.mxu1 %v1187_v41 }
  0x62   :  { %1160 = vmatprep.subr.bf16.mxu0 %v1159_v38 }
  0x64   :  { %1190 = vmatpush3.bf16.msra.mxu1 %v1187_v41 }
  0x65   :  { %1162 = vmatpush3.bf16.msra.mxu0 %v1159_v38  ;;  %1192 = vmatprep.subr.bf16.mxu1 %v1191_v45 }
  0x66   :  { %1164 = vmatprep.subr.bf16.mxu0 %v1163_v44 }
  0x68   :  { %1194 = vmatpush3.bf16.msra.mxu1 %v1191_v45 }
  0x69   :  { %1166 = vmatpush3.bf16.msra.mxu0 %v1163_v44  ;;  %1196 = vmatprep.subr.bf16.mxu1 %v1195_v48 }
  0x6a   :  { %1200 = vmatprep.subr.bf16.mxu0 %v1199_v2 }
  0x6c   :  { %1000 = vmatmul.mubr.f32.vlgmr.msra.gmra.mrb[0].mxu0 %v110_v49  ;;  %1198 = vmatpush3.bf16.msra.mxu1 %v1195_v48 }
  0x6d   :  { %1002 = vmatprep.mubr.f32.mxu0 %v111_v50  ;;  %1231 = vmatprep.subr.bf16.mxu1 %v1199_v2 }
  0x6e   :  { %1202 = vmatpush3.bf16.msra.mxu0 %v1199_v2 }
  0x6f   :  { %1056 = vmatmul.mubr.f32.vlgmr.msra.gmra.mrb[0].mxu1 %v110_v49  ;;  %1204 = vmatprep.subr.bf16.mxu0 %v1203_v5 }
  0x70   :  { %1003 = vmatmul.mubr.f32.gmra.mrb[2].mxu0 %v112_v51  ;;  %1058 = vmatprep.mubr.f32.mxu1 %v111_v50 }
  0x71   :  { %1005 = vmatprep.mubr.f32.mxu0 %v113_v52  ;;  %1239 = vmatpush3.bf16.msra.mxu1 %v1199_v2 }
  0x72   :  { %1232 = vmatprep.subr.bf16.mxu1 %v1203_v5  ;;  %1206 = vmatpush3.bf16.msra.mxu0 %v1203_v5 }
  0x73   :  { %1059 = vmatmul.mubr.f32.gmra.mrb[2].mxu1 %v112_v51  ;;  %1208 = vmatprep.subr.bf16.mxu0 %v1207_v8 }
  0x74   :  { %1006 = vmatmul.mubr.f32.gmra.mrb[4].mxu0 %v114_v53  ;;  %1061 = vmatprep.mubr.f32.mxu1 %v113_v52 }
  0x75   :  { %1008 = vmatprep.mubr.f32.mxu0 %v115_v54  ;;  %1240 = vmatpush3.bf16.msra.mxu1 %v1203_v5 }
  0x76   :  { %1233 = vmatprep.subr.bf16.mxu1 %v1207_v8  ;;  %1210 = vmatpush3.bf16.msra.mxu0 %v1207_v8 }
  0x77   :  { %1062 = vmatmul.mubr.f32.gmra.mrb[4].mxu1 %v114_v53  ;;  %1212 = vmatprep.subr.bf16.mxu0 %v1211_v11 }
  0x78   :  { %1009 = vmatmul.mubr.f32.gmra.mrb[6].mxu0 %v116_v55  ;;  %1064 = vmatprep.mubr.f32.mxu1 %v115_v54 }
  0x79   :  { %1011 = vmatprep.mubr.f32.mxu0 %v117_v56  ;;  %1241 = vmatpush3.bf16.msra.mxu1 %v1207_v8 }
  0x7a   :  { %1234 = vmatprep.subr.bf16.mxu1 %v1211_v11  ;;  %1214 = vmatpush3.bf16.msra.mxu0 %v1211_v11 }
  0x7b   :  { %1065 = vmatmul.mubr.f32.gmra.mrb[6].mxu1 %v116_v55  ;;  %1216 = vmatprep.subr.bf16.mxu0 %v1215_v14 }
  0x7c   :  { %1012 = vmatmul.mubr.f32.gmra.mrb[8].mxu0 %v118_v57  ;;  %1067 = vmatprep.mubr.f32.mxu1 %v117_v56 }
  0x7d   :  { %1014 = vmatprep.mubr.f32.mxu0 %v119_v58  ;;  %1242 = vmatpush3.bf16.msra.mxu1 %v1211_v11 }
  0x7e   :  { %1235 = vmatprep.subr.bf16.mxu1 %v1215_v14  ;;  %1218 = vmatpush3.bf16.msra.mxu0 %v1215_v14 }
  0x7f   :  { %1068 = vmatmul.mubr.f32.gmra.mrb[8].mxu1 %v118_v57  ;;  %1220 = vmatprep.subr.bf16.mxu0 %v1219_v17 }
  0x80   :  { %1015 = vmatmul.mubr.f32.gmra.mrb[10].mxu0 %v120_v59  ;;  %1070 = vmatprep.mubr.f32.mxu1 %v119_v58 }
  0x81   :  { %1017 = vmatprep.mubr.f32.mxu0 %v121_v60  ;;  %1243 = vmatpush3.bf16.msra.mxu1 %v1215_v14 }
  0x82   :  { %1236 = vmatprep.subr.bf16.mxu1 %v1219_v17  ;;  %1222 = vmatpush3.bf16.msra.mxu0 %v1219_v17 }
  0x83   :  { %1071 = vmatmul.mubr.f32.gmra.mrb[10].mxu1 %v120_v59  ;;  %1224 = vmatprep.subr.bf16.mxu0 %v1223_v20 }
  0x84   :  { %1018 = vmatmul.mubr.f32.gmra.mrb[12].mxu0 %v122_v61  ;;  %1073 = vmatprep.mubr.f32.mxu1 %v121_v60 }
  0x85   :  { %1020 = vmatprep.mubr.f32.mxu0 %v123_v62  ;;  %1244 = vmatpush3.bf16.msra.mxu1 %v1219_v17 }
  0x86   :  { %1237 = vmatprep.subr.bf16.mxu1 %v1223_v20  ;;  %1226 = vmatpush3.bf16.msra.mxu0 %v1223_v20 }
  0x87   :  { %1074 = vmatmul.mubr.f32.gmra.mrb[12].mxu1 %v122_v61  ;;  %1228 = vmatprep.subr.bf16.mxu0 %v1227_v23 }
  0x88   :  { %1021 = vmatmul.mubr.f32.gmra.mrb[14].mxu0 %v124_v63  ;;  %1076 = vmatprep.mubr.f32.mxu1 %v123_v62 }
  0x89   :  { %1245 = vmatpush3.bf16.msra.mxu1 %v1223_v20 }
  0x8a   :  { %1238 = vmatprep.subr.bf16.mxu1 %v1227_v23  ;;  %1230 = vmatpush3.bf16.msra.mxu0 %v1227_v23 }
  0x8b   :  { %1077 = vmatmul.mubr.f32.gmra.mrb[14].mxu1 %v124_v63 }
  0x8d   :  { %1246 = vmatpush3.bf16.msra.mxu1 %v1227_v23 }
 0x13f   :  { %v1001_v25 = vpop.f32.mrb[0].mxu0 }
 0x140   :  { %v1563_v26 = vadd.f32 %v1001_v25, %v1560_v24  ;;  %v214_v27 = vpop.f32.mrb[1].mxu0 }
 0x141   :  { %v1566_v28 = vadd.f32 %v1560_v24, %v214_v27 }
 0x142   :  { %v856_v29 = vmul.f32 -1.442695, %v1563_v26  ;;  %v1573_v34 = vpop.f32.mrb[0].mxu1 }
 0x143   :  { %v855_v30 = vmul.f32 -1.442695, %v1566_v28  ;;  %v1004_v31 = vpop.f32.mrb[2].mxu0  ;;  %v1578_v36 = vpop.f32.mrb[1].mxu1 }
 0x144   :  { %1254 = vpow2.f32 %v856_v29  ;;  %v1571_v32 = vadd.f32 %v1004_v31, %v1560_v24  ;;  %v224_v33 = vpop.f32.mrb[3].mxu0  ;;  %v388_v31 = vadd.f32 %v1573_v34, %v1633_v19 }
 0x145   :  { %1256 = vpow2.f32 %v855_v30  ;;  %v1576_v35 = vadd.f32 %v1560_v24, %v224_v33 }
 0x146   :  { %v858_v37 = vmul.f32 -1.442695, %v1571_v32  ;;  %v1585_v42 = vpop.f32.mrb[2].mxu1 }
 0x147   :  { %v857_v38 = vmul.f32 -1.442695, %v1576_v35  ;;  %v1007_v39 = vpop.f32.mrb[4].mxu0  ;;  %v1590_v44 = vpop.f32.mrb[3].mxu1 }
 0x148   :  { %1258 = vpow2.f32 %v858_v37  ;;  %v1583_v40 = vadd.f32 %v1007_v39, %v1560_v24  ;;  %v234_v41 = vpop.f32.mrb[5].mxu0 }
 0x149   :  { %1260 = vpow2.f32 %v857_v38  ;;  %v1588_v43 = vadd.f32 %v1560_v24, %v234_v41  ;;  %v383_v41 = vadd.f32 %v1633_v19, %v1578_v36  ;;  %v398_v36 = vadd.f32 %v1585_v42, %v1633_v19 }
 0x14a   :  { %v860_v45 = vmul.f32 -1.442695, %v1583_v40  ;;  %v1597_v50 = vpop.f32.mrb[4].mxu1 }
 0x14b   :  { %v859_v46 = vmul.f32 -1.442695, %v1588_v43  ;;  %v1010_v47 = vpop.f32.mrb[6].mxu0  ;;  %v1602_v52 = vpop.f32.mrb[5].mxu1 }
 0x14c   :  { %1262 = vpow2.f32 %v860_v45  ;;  %v1595_v48 = vadd.f32 %v1010_v47, %v1560_v24  ;;  %v244_v49 = vpop.f32.mrb[7].mxu0 }
 0x14d   :  { %1264 = vpow2.f32 %v859_v46  ;;  %v1600_v51 = vadd.f32 %v1560_v24, %v244_v49 }
 0x14e   :  { %v1255_v53 = vpop.eup %1254  ;;  %v862_v54 = vmul.f32 -1.442695, %v1595_v48  ;;  %v1609_v62 = vpop.f32.mrb[6].mxu1 }
 0x14f   :  { %v1257_v55 = vpop.eup %1256  ;;  %v510_v56 = vadd.f32 1.0, %v1255_v53  ;;  %v861_v57 = vmul.f32 -1.442695, %v1600_v51  ;;  %v1013_v58 = vpop.f32.mrb[8].mxu0 }
 0x150   :  { %v509_v59 = vadd.f32 1.0, %v1257_v55  ;;  %1266 = vpow2.f32 %v862_v54  ;;  %v1607_v60 = vadd.f32 %v1013_v58, %v1560_v24  ;;  %v254_v61 = vpop.f32.mrb[9].mxu0  ;;  %v1614_v0 = vpop.f32.mrb[7].mxu1 }
 0x151   :  { %1268 = vrcp.f32 %v510_v56  ;;  %v1612_v63 = vadd.f32 %v1560_v24, %v254_v61 }
 0x152   :  { %v1259_v1 = vpop.eup %1258  ;;  %1270 = vrcp.f32 %v509_v59  ;;  %v864_v2 = vmul.f32 -1.442695, %v1607_v60  ;;  %v1621_v10 = vpop.f32.mrb[8].mxu1 }
 0x153   :  { %v1261_v3 = vpop.eup %1260  ;;  %v512_v4 = vadd.f32 1.0, %v1259_v1  ;;  %1272 = vpow2.f32 %v861_v57  ;;  %v863_v5 = vmul.f32 -1.442695, %v1612_v63  ;;  %v1016_v6 = vpop.f32.mrb[10].mxu0 }
 0x154   :  { %v511_v7 = vadd.f32 1.0, %v1261_v3  ;;  %1274 = vpow2.f32 %v864_v2  ;;  %v1619_v8 = vadd.f32 %v1016_v6, %v1560_v24  ;;  %v264_v9 = vpop.f32.mrb[11].mxu0  ;;  %v1626_v12 = vpop.f32.mrb[9].mxu1 }
 0x155   :  { %1276 = vrcp.f32 %v512_v4  ;;  %v1624_v11 = vadd.f32 %v1560_v24, %v264_v9 }
 0x156   :  { %v1263_v13 = vpop.eup %1262  ;;  %1278 = vrcp.f32 %v511_v7  ;;  %v866_v14 = vmul.f32 -1.442695, %v1619_v8  ;;  %v1638_v23 = vpop.f32.mrb[10].mxu1 }
 0x157   :  { %v1265_v15 = vpop.eup %1264  ;;  %v514_v16 = vadd.f32 1.0, %v1263_v13  ;;  %1280 = vpow2.f32 %v863_v5  ;;  %v865_v17 = vmul.f32 -1.442695, %v1624_v11  ;;  %v1019_v18 = vpop.f32.mrb[12].mxu0 }
 0x158   :  { %v513_v20 = vadd.f32 1.0, %v1265_v15  ;;  %1282 = vpow2.f32 %v866_v14  ;;  %v1636_v21 = vadd.f32 %v1019_v18, %v1560_v24  ;;  %v274_v22 = vpop.f32.mrb[13].mxu0  ;;  %v1643_v27 = vpop.f32.mrb[11].mxu1 }
 0x159   :  { %1284 = vrcp.f32 %v514_v16  ;;  %v1641_v25 = vadd.f32 %v1560_v24, %v274_v22 }
 0x15a   :  { %v1267_v29 = vpop.eup %1266  ;;  %1286 = vrcp.f32 %v513_v20  ;;  %v868_v30 = vmul.f32 -1.442695, %v1636_v21  ;;  %v1655_v53 = vpop.f32.mrb[12].mxu1 }
 0x15b   :  { %v1269_v33 = vpop.eup %1268  ;;  %v516_v37 = vadd.f32 1.0, %v1267_v29  ;;  %1288 = vpow2.f32 %v865_v17  ;;  %v867_v38 = vmul.f32 -1.442695, %v1641_v25  ;;  %v1022_v39 = vpop.f32.mrb[14].mxu0  ;;  %v403_v17 = vadd.f32 %v1633_v19, %v1602_v52 }
 0x15c   :  { %v1271_v45 = vpop.eup %1270  ;;  %v558_v46 = vmul.f32 %v1269_v33, %v1563_v26  ;;  %1290 = vpow2.f32 %v868_v30  ;;  %v1653_v47 = vadd.f32 %v1022_v39, %v1560_v24  ;;  %v284_v49 = vpop.f32.mrb[15].mxu0 }
 0x15d   :  { %v1273_v34 = vpop.eup %1272  ;;  %v557_v54 = vmul.f32 %v1271_v45, %v1566_v28  ;;  %1292 = vrcp.f32 %v516_v37  ;;  %v1659_v55 = vadd.f32 %v1560_v24, %v284_v49  ;;  %v1663_v56 = vpop.f32.mrb[13].mxu1  ;;  %v393_v24 = vadd.f32 %v1633_v19, %v1590_v44 }
 0x15e   :  { %v1275_v26 = vpop.eup %1274  ;;  %v515_v57 = vadd.f32 1.0, %v1273_v34  ;;  %1294 = vpow2.f32 %v867_v38  ;;  %v574_v58 = vmul.f32 %v558_v46, %v388_v31  ;;  %v870_v59 = vmul.f32 -1.442695, %v1653_v47  ;;  %v1670_v42 = vpop.f32.mrb[14].mxu1 }
 0x15f   :  { %v1277_v61 = vpop.eup %1276  ;;  %v518_v1 = vadd.f32 1.0, %v1275_v26  ;;  %v573_v2 = vmul.f32 %v557_v54, %v383_v41  ;;  %v869_v28 = vmul.f32 -1.442695, %v1659_v55  ;;  %v1673_v7 = vpop.f32.mrb[15].mxu1  ;;  %v408_v44 = vadd.f32 %v1597_v50, %v1633_v19 }
 0x160   :  { %v1279_v3 = vpop.eup %1278  ;;  %v560_v4 = vmul.f32 %v1277_v61, %v1571_v32  ;;  %1296 = vrcp.f32 %v515_v57  ;;  %v418_v31 = vadd.f32 %v1609_v62, %v1633_v19  ;;  %v428_v46 = vadd.f32 %v1621_v10, %v1633_v19 }
 0x161   :  { %v1281_v5 = vpop.eup %1280  ;;  %v559_v6 = vmul.f32 %v1279_v3, %v1576_v35  ;;  %1298 = vrcp.f32 %v518_v1  ;;  %1111 = vmatprep.mubr.f32.mxu0 %v573_v2  ;;  %v438_v10 = vadd.f32 %v1638_v23, %v1633_v19  ;;  %v433_v2 = vadd.f32 %v1633_v19, %v1643_v27 }
 0x162   :  { %v1283_v9 = vpop.eup %1282  ;;  %v517_v13 = vadd.f32 1.0, %v1281_v5  ;;  %1300 = vpow2.f32 %v870_v59  ;;  %v576_v14 = vmul.f32 %v560_v4, %v398_v36  ;;  %1112 = vmatmul.mubr.f32.vlgmr.msra.gmra.mrb[16].mxu0 %v574_v58 }
 0x163   :  { %v1285_v15 = vpop.eup %1284  ;;  %v520_v32 = vadd.f32 1.0, %v1283_v9  ;;  %1302 = vpow2.f32 %v869_v28  ;;  %v575_v16 = vmul.f32 %v559_v6, %v393_v24  ;;  %v448_v24 = vadd.f32 %v1655_v53, %v1633_v19 }
 0x164   :  { %v1287_v35 = vpop.eup %1286  ;;  %v562_v18 = vmul.f32 %v1285_v15, %v1583_v40  ;;  %1304 = vrcp.f32 %v517_v13  ;;  %v458_v53 = vadd.f32 %v1670_v42, %v1633_v19  ;;  %v852_v42 = vld [vmem:[%s1735_s6] ss:$0 sm:$0xff]  ;;  %s1442_s6 = smov [#allocation11]  }
 0x165   :  { %v1289_v20 = vpop.eup %1288  ;;  %v561_v22 = vmul.f32 %v1287_v35, %v1588_v43  ;;  %1306 = vrcp.f32 %v520_v32  ;;  %1114 = vmatprep.mubr.f32.mxu0 %v575_v16  ;;  %v413_v43 = vadd.f32 %v1633_v19, %v1614_v0  ;;  %v423_v0 = vadd.f32 %v1633_v19, %v1626_v12  ;;  %s838_s30 = sshll.u32 %s1442_s6, 4  ;;  %s839_s30 = int_to_ptr.vmem [resolvable:$true] %s838_s30 }
 0x166   :  { %v1291_v29 = vpop.eup %1290  ;;  %v519_v30 = vadd.f32 1.0, %v1289_v20  ;;  %v578_v50 = vmul.f32 %v562_v18, %v408_v44  ;;  %1115 = vmatmul.mubr.f32.gmra.mrb[18].mxu0 %v576_v14  ;;  %s1406_s8 = scalar_lea.vmem %s839_s30, 2048  ;;  %p1411_p5 = scmp.lt.s32.totalorder %s839_s30, %s839_s30 }
 0x167   :  { %v1293_v33 = vpop.eup %1292  ;;  %v522_v37 = vadd.f32 1.0, %v1291_v29  ;;  %v577_v38 = vmul.f32 %v561_v22, %v403_v17  ;;  %p1407_p4 = scmp.ne.s32.totalorder %s839_s30, %s1406_s8  ;;  %p1412_p6 = scmp.lt.s32.totalorder %s1406_s8, %s1406_s8 }
 0x168   :  { %v1295_v52 = vpop.eup %1294  ;;  %v564_v39 = vmul.f32 %v1293_v33, %v1595_v48  ;;  %1308 = vrcp.f32 %v519_v30 }
 0x169   :  { %1310 = vrcp.f32 %v522_v37  ;;  %v521_v40 = vadd.f32 1.0, %v1295_v52  ;;  %1117 = vmatprep.mubr.f32.mxu0 %v577_v38  ;;  %p1413_p7 = por %p1412_p6, %p1411_p5 }
 0x16a   :  { %v1297_v41 = vpop.eup %1296  ;;  %v580_v45 = vmul.f32 %v564_v39, %v418_v31  ;;  %1118 = vmatmul.mubr.f32.gmra.mrb[20].mxu0 %v578_v50 }
 0x16b   :  { %v1299_v62 = vpop.eup %1298  ;;  %v563_v49 = vmul.f32 %v1297_v41, %v1600_v51  ;;  %1312 = vrcp.f32 %v521_v40  ;;  %p1414_p8 = pnand %p1413_p7, %p1407_p4 }
 0x16c   :  { %v1301_v34 = vpop.eup %1300  ;;  %v566_v48 = vmul.f32 %v1299_v62, %v1607_v60 }
 0x16d   :  { %v1303_v54 = vpop.eup %1302  ;;  %v524_v36 = vadd.f32 1.0, %v1301_v34  ;;  %v579_v26 = vmul.f32 %v563_v49, %v413_v43 }
 0x16e   :  { %v1305_v57 = vpop.eup %1304  ;;  %v523_v58 = vadd.f32 1.0, %v1303_v54  ;;  %v582_v59 = vmul.f32 %v566_v48, %v428_v46 }
 0x16f   :  { %v1307_v61 = vpop.eup %1306  ;;  %v565_v1 = vmul.f32 %v1305_v57, %v1612_v63  ;;  %1314 = vrcp.f32 %v524_v36  ;;  %1120 = vmatprep.mubr.f32.mxu0 %v579_v26 }
 0x170   :  { %v568_v51 = vmul.f32 %v1307_v61, %v1619_v8  ;;  %1316 = vrcp.f32 %v523_v58  ;;  %1121 = vmatmul.mubr.f32.gmra.mrb[22].mxu0 %v580_v45  ;;  %v443_v8 = vadd.f32 %v1633_v19, %v1663_v56 }
 0x171   :  { %v581_v60 = vmul.f32 %v565_v1, %v423_v0 }
 0x172   :  { %v1309_v12 = vpop.eup %1308  ;;  %v584_v28 = vmul.f32 %v568_v51, %v438_v10 }
 0x173   :  { %v1311_v3 = vpop.eup %1310  ;;  %v567_v23 = vmul.f32 %v1309_v12, %v1624_v11  ;;  %1123 = vmatprep.mubr.f32.mxu1 %v581_v60  ;;  %v453_v11 = vadd.f32 %v1633_v19, %v1673_v7 }
 0x174   :  { %v570_v63 = vmul.f32 %v1311_v3, %v1636_v21  ;;  %1124 = vmatmul.mubr.f32.vlgmr.msra.gmra.mrb[16].mxu1 %v582_v59 }
 0x175   :  { %v1313_v4 = vpop.eup %1312  ;;  %v583_v5 = vmul.f32 %v567_v23, %v433_v2 }
 0x176   :  { %v569_v6 = vmul.f32 %v1313_v4, %v1641_v25  ;;  %v586_v27 = vmul.f32 %v570_v63, %v448_v24 }
 0x177   :  { %1126 = vmatprep.mubr.f32.mxu1 %v583_v5 }
 0x178   :  { %v585_v9 = vmul.f32 %v569_v6, %v443_v8  ;;  %1127 = vmatmul.mubr.f32.gmra.mrb[18].mxu1 %v584_v28 }
 0x179   :  { %v1315_v13 = vpop.eup %1314 }
 0x17a   :  { %v1317_v21 = vpop.eup %1316  ;;  %v572_v14 = vmul.f32 %v1315_v13, %v1653_v47  ;;  %1129 = vmatprep.mubr.f32.mxu1 %v585_v9 }
 0x17b   :  { %v571_v56 = vmul.f32 %v1317_v21, %v1659_v55 }
 0x17c   :  { %v588_v44 = vmul.f32 %v572_v14, %v458_v53  ;;  %1130 = vmatmul.mubr.f32.gmra.mrb[20].mxu1 %v586_v27 }
 0x17d   :  { %v587_v25 = vmul.f32 %v571_v56, %v453_v11 }
 0x17f   :  { %1132 = vmatprep.mubr.f32.mxu1 %v587_v25 }
 0x180   :  { %1133 = vmatmul.mubr.f32.gmra.mrb[22].mxu1 %v588_v44 }
 0x235   :  { %v1113_v15 = vpop.f32.mrb[16].mxu0 }
 0x236   :  { %v767_v32 = vadd.f32 %v1113_v15, %v852_v42  ;;  %v687_v16 = vpop.f32.mrb[17].mxu0 }
 0x237   :  { %v766_v17 = vadd.f32 %v852_v42, %v687_v16 }
 0x238   :  { %818 = vst [vmem:[#allocation11 + $0x8] sm:$0xff] %v767_v32 }
 0x239   :  { %817 = vst [vmem:[#allocation11] sm:$0xff] %v766_v17  ;;  %v1116_v19 = vpop.f32.mrb[18].mxu0 }
 0x23a   :  { %v769_v47 = vadd.f32 %v1116_v19, %v852_v42  ;;  %v697_v7 = vpop.f32.mrb[19].mxu0 }
 0x23b   :  { %v768_v35 = vadd.f32 %v852_v42, %v697_v7 }
 0x23c   :  { %820 = vst [vmem:[#allocation11 + $0x18] sm:$0xff] %v769_v47 }
 0x23d   :  { %819 = vst [vmem:[#allocation11 + $0x10] sm:$0xff] %v768_v35  ;;  %v1119_v55 = vpop.f32.mrb[20].mxu0 }
 0x23e   :  { %v771_v18 = vadd.f32 %v1119_v55, %v852_v42  ;;  %v707_v20 = vpop.f32.mrb[21].mxu0 }
 0x23f   :  { %v770_v22 = vadd.f32 %v852_v42, %v707_v20 }
 0x240   :  { %822 = vst [vmem:[#allocation11 + $0x28] sm:$0xff] %v771_v18 }
 0x241   :  { %821 = vst [vmem:[#allocation11 + $0x20] sm:$0xff] %v770_v22 }
 0x243   :  { %v1122_v29 = vpop.f32.mrb[22].mxu0 }
 0x244   :  { %v773_v30 = vadd.f32 %v1122_v29, %v852_v42  ;;  %v717_v50 = vpop.f32.mrb[23].mxu0 }
 0x245   :  { %v772_v31 = vadd.f32 %v852_v42, %v717_v50 }
 0x246   :  { %824 = vst [vmem:[#allocation11 + $0x38] sm:$0xff] %v773_v30 }
 0x247   :  { %823 = vst [vmem:[#allocation11 + $0x30] sm:$0xff] %v772_v31  ;;  %v1125_v33 = vpop.f32.mrb[16].mxu1 }
 0x248   :  { %v775_v37 = vadd.f32 %v1125_v33, %v852_v42  ;;  %v727_v38 = vpop.f32.mrb[17].mxu1 }
 0x249   :  { %v774_v52 = vadd.f32 %v852_v42, %v727_v38 }
 0x24a   :  { %826 = vst [vmem:[#allocation11 + $0x48] sm:$0xff] %v775_v37 }
 0x24b   :  { %825 = vst [vmem:[#allocation11 + $0x40] sm:$0xff] %v774_v52  ;;  %v1128_v39 = vpop.f32.mrb[18].mxu1 }
 0x24c   :  { %v777_v40 = vadd.f32 %v1128_v39, %v852_v42  ;;  %v737_v43 = vpop.f32.mrb[19].mxu1 }
 0x24d   :  { %v776_v41 = vadd.f32 %v852_v42, %v737_v43 }
 0x24e   :  { %828 = vst [vmem:[#allocation11 + $0x58] sm:$0xff] %v777_v40 }
 0x24f   :  { %827 = vst [vmem:[#allocation11 + $0x50] sm:$0xff] %v776_v41  ;;  %v1131_v45 = vpop.f32.mrb[20].mxu1 }
 0x250   :  { %v779_v46 = vadd.f32 %v1131_v45, %v852_v42  ;;  %v747_v62 = vpop.f32.mrb[21].mxu1 }
 0x251   :  { %v778_v49 = vadd.f32 %v852_v42, %v747_v62 }
 0x252   :  { %830 = vst [vmem:[#allocation11 + $0x68] sm:$0xff] %v779_v46 }
 0x253   :  { %829 = vst [vmem:[#allocation11 + $0x60] sm:$0xff] %v778_v49  ;;  %v1134_v34 = vpop.f32.mrb[22].mxu1 }
 0x254   :  { %v781_v48 = vadd.f32 %v1134_v34, %v852_v42  ;;  %v757_v54 = vpop.f32.mrb[23].mxu1 }
 0x255   :  { %v780_v36 = vadd.f32 %v852_v42, %v757_v54 }
 0x256   :  { %832 = vst [vmem:[#allocation11 + $0x78] sm:$0xff] %v781_v48 }
 0x257   :  { %831 = vst [vmem:[#allocation11 + $0x70] sm:$0xff] %v780_v36 }
 0x258   :  { %1417 = shalt.err (!%p1414_p8)
}
 0x259   :  { %s1418_s11 = scalar_lea.hbm %s1736_s7, 2048 }
 0x25a   :  { %p1419_p9 = scmp.ne.s32.totalorder %s1736_s7, %s1418_s11  ;;  %p1422_p10 = scmp.lt.u32.totalorder %s1418_s11, %s1736_s7 }
 0x25c   :  { %p1424_p11 = pnand %p1422_p10, %p1419_p9 }
 0x25e   :  { %1427 = shalt.err (!%p1424_p11)
}
 0x25f   :  { %844 = dma.vmem_to_hbm [thread:$0]  %s839_s30, 2048, %s1736_s7, [#allocation5], %s1438_s13, %s1438_s13, %s1439_s14  }
 0x260   :  { %1434 = dma.done.wait [#allocation5], 2048  }
 0x261   :  { %1435 = vsyncadd [#allocation5], 4294965248 }
 0x262   :  { %848 = vsyncpa [#allocation4], 1 }
 0x263   :  { %849 = vsyncpa [#allocation7], 1 }
 0x264   :  { %850 = vsyncpa [#allocation10], 1 }
 0x265   :  { %851 = vsyncpa [#allocation5], 1 }

</bundles_post_ra>
